<compile_context>
chip_gen: v7x
topology: tpu7x:2x2x1
jax: 0.10.0
libtpu: 0.0.40
codegen_flags: <defaults>
</compile_context>

<pallas_src>
import functools
import numpy as np
import jax
import jax.numpy as jnp
from jax.experimental import pallas as pl
from jax.experimental.pallas import tpu as pltpu

# ----------------------------- configuration --------------------------------
B = 2            # batch (number of conversations)
C = 4            # max_conv_length
U = 8            # max_utterance_length
V = 32           # len(train_vocab)
N_MOVIES = 16
D_EMB = 16
SENT_HID = 8                         # sentence_encoder_hidden_size
CONV_HID = 32                        # conversation_encoder_hidden_size
USER_REP = 24                        # autorec user_representation_size
LATENT_SIZES = [16, 8]               # params['latent_layer_sizes']
LATENT = LATENT_SIZES[-1]
DEC_HID = 32
CONTEXT_SIZE = CONV_HID + LATENT
OUT_SLAB = 128                       # lane-dense output width for every kernel

# column layout of the K1 output slab
_CF0, _CF1 = 0, CONV_HID                       # shifted conversation reps ((b,t) order)
_UR0, _UR1 = _CF1, _CF1 + USER_REP             # user representation, (b,t) order
_MU0, _MU1 = _UR1, _UR1 + LATENT               # prior mu      ((b,t) order, shifted rows)
_LV0, _LV1 = _MU1, _MU1 + LATENT               # prior logvar


# ------------------------------ spec helpers ---------------------------------
def _full(shape):
    """Full-array VMEM block (constant index map) for a 1-D grid."""
    zeros = (0,) * len(shape)
    return pl.BlockSpec(shape, lambda i, _z=zeros: _z)


_PAR = pltpu.CompilerParams(dimension_semantics=("parallel",))


def _pack_linear_slab(pieces):
    """Pack [(name, W(fin,fout), b(fout,)), ...] into one VMEM slab.

    Each piece is stored as [W; b] starting at an 8-aligned row offset, padded on the
    lane axis to the widest fout.  Returns (slab, offsets) with
    offsets[name] = (row_offset, fin, fout) -- all static Python ints.
    """
    width = max(int(w.shape[1]) for _, w, _ in pieces)
    mats, offs, row = [], {}, 0
    for name, w, b in pieces:
        wb = jnp.concatenate([w, b.reshape(1, -1)], axis=0).astype(jnp.float32)
        fin1, fout = int(wb.shape[0]), int(wb.shape[1])
        wb = jnp.pad(wb, ((0, (-fin1) % 8), (0, width - fout)))
        offs[name] = (row, int(w.shape[0]), fout)
        mats.append(wb)
        row += int(wb.shape[0])
    return jnp.concatenate(mats, axis=0), offs


def _wb(p_ref, offs, name):
    """Static-slice load of (W, b) from a packed parameter slab ref."""
    r0, fin, fout = offs[name]
    w = p_ref[r0:r0 + fin, :fout]
    b = p_ref[r0 + fin:r0 + fin + 1, :fout]
    return w, b


def _sigmoid(x):
    # exp on the EUP + approximate reciprocal (EUP) -> keeps the VALU slot free.
    return pl.reciprocal(1.0 + jnp.exp(-x), approx=True)


# ------------------------------ Pallas kernels -------------------------------
def _encoder_latent_kernel(act_ref, p_ref, o_ref, *, offs, turns):
    """Fused: sentence proj -> causal mean (XLU rolls) -> conv proj -> language_to_user
    -> shift-one-turn -> prior hidden -> concatenated mu|logvar heads.
    One packed activation input, one packed parameter slab, one 128-lane store."""
    f32 = jnp.float32
    pooled = act_ref[:, :D_EMB]                       # (R, D)
    send = act_ref[:, D_EMB:D_EMB + 1]                # (R, 1)  sender bit
    tpos = act_ref[:, D_EMB + 1:D_EMB + 2]            # (R, 1)  turn index within conversation

    # TODO(synk): real HRNN = GenSen embeddings + GRU sentence/conversation encoders
    # (source unavailable); stand-in = projections of masked-mean / causal-mean pools.
    w, b = _wb(p_ref, offs, "sent")
    sent = jnp.tanh(jnp.dot(pooled, w, preferred_element_type=f32) + b)      # (R, 2S)
    x = jnp.concatenate([sent, send], axis=-1)                               # (R, 2S+1)

    # causal mean over turns of the same conversation: XLU sublane rolls + mask,
    # no O((B*C)^2) dense matrix.
    acc = x
    for k in range(1, turns):
        acc = acc + jnp.where(tpos >= float(k), pltpu.roll(x, k, 0), 0.0)
    x = acc / (tpos + 1.0)

    w, b = _wb(p_ref, offs, "conv")
    conv = jnp.tanh(jnp.dot(x, w, preferred_element_type=f32) + b)           # (R, CONV_HID)
    w, b = _wb(p_ref, offs, "l2u")
    urep = jnp.dot(conv, w, preferred_element_type=f32) + b                  # (R, USER_REP)

    # shift one turn (pad first turn with zeros), per conversation: masked roll.
    conv_sh = jnp.where(tpos >= 1.0, pltpu.roll(conv, 1, 0), 0.0)            # (R, CONV_HID)

    w, b = _wb(p_ref, offs, "prior")
    hp = jnp.maximum(jnp.dot(conv_sh, w, preferred_element_type=f32) + b, 0.0)
    w, b = _wb(p_ref, offs, "musig")
    ml = jnp.dot(hp, w, preferred_element_type=f32) + b                      # (R, 2*LATENT)

    rows = conv.shape[0]
    pad = jnp.zeros((rows, OUT_SLAB - _LV1), f32)
    o_ref[...] = jnp.concatenate([conv_sh, urep, ml, pad], axis=-1)


def _recommend_kernel(pooled_ref, sel_ref, onehot_ref, urep_ref, p_ref, o_ref,
                      *, offs, n_movies):
    """Fused: sentiment head on (P*C) rows + gated scatter (placement @ one-hot matmuls)
    + AutoRec encoder/decoder.  No B-replicated inputs."""
    f32 = jnp.float32
    # TODO(synk): real SentimentAnalysis is a GRU classifier over GenSen encodings;
    # stand-in = sigmoid head over occurrence-pooled embeddings.
    w, b = _wb(p_ref, offs, "sa")                                            # w: (1, D)
    s = jnp.sum(pooled_ref[...] * w, axis=-1, keepdims=True) + b[:, :1]      # (P*C, 1)
    likes = _sigmoid(s)
    # exact RecommendFromDialogue scatter + cumsum gating + conversation selection,
    # folded into host-built sel (B*C, P*C) and onehot (P*C, n_movies) matrices:
    #   x[(b,t), movieId[p]] = likes[p,t] * gate[p,t] * [batch_ids[p]==b]
    x = jnp.dot(sel_ref[...], likes * onehot_ref[...], preferred_element_type=f32)
    # TODO(synk): AutoRec internals unspecified; 1-hidden-layer autoencoder with the
    # language user representation added to the hidden pre-activation, range01=False.
    w, b = _wb(p_ref, offs, "enc")
    h = _sigmoid(jnp.dot(x, w, preferred_element_type=f32) + b + urep_ref[...])
    w, b = _wb(p_ref, offs, "dec")
    y = jnp.dot(h, w, preferred_element_type=f32) + b                        # (B*C, n_movies)
    rows = y.shape[0]
    pad = jnp.zeros((rows, OUT_SLAB - n_movies), f32)
    o_ref[...] = jnp.concatenate([y, pad], axis=-1)


def _decoder_head_kernel(emb_ref, ctx_ref, rec_ref, p_ref, o_ref,
                         *, offs, vocab, n_movies):
    """Per conversation-turn grid step (U tokens per step).  Context projection and the
    movie log-softmax are computed once per step and broadcast over the U token rows."""
    f32 = jnp.float32
    i = pl.program_id(0)
    ctx_row = ctx_ref[pl.ds(i, 1), :]                                        # (1, CTX)
    rec_row = rec_ref[pl.ds(i, 1), :]                                        # (1, M)

    # TODO(synk): real SwitchingDecoder is a context-conditioned GRU; stand-in is a
    # non-recurrent token MLP.  The switching log-softmax output head is exact
    # (log_probabilities=True, sample_movies=False).
    w, b = _wb(p_ref, offs, "c2h")            # b already holds b_c2h + b_e2h (folded)
    ctx_h = jnp.dot(ctx_row, w, preferred_element_type=f32) + b              # (1, DEC_HID)
    w, _ = _wb(p_ref, offs, "e2h")
    h = jnp.tanh(jnp.dot(emb_ref[...], w, preferred_element_type=f32) + ctx_h)  # (U, DEC_HID)

    w, b = _wb(p_ref, offs, "lang")
    lang = jnp.dot(h, w, preferred_element_type=f32) + b                     # (U, V)
    lang = lang - jnp.max(lang, axis=-1, keepdims=True)
    lang_log = lang - jnp.log(jnp.sum(jnp.exp(lang), axis=-1, keepdims=True))

    rec = rec_row - jnp.max(rec_row, axis=-1, keepdims=True)                 # (1, M)
    rec_log = rec - jnp.log(jnp.sum(jnp.exp(rec), axis=-1, keepdims=True))

    w, b = _wb(p_ref, offs, "sw")                                            # w: (1, DEC_HID)
    sw = jnp.sum(h * w, axis=-1, keepdims=True) + b[:, :1]                   # (U, 1)
    # numerically stable log-sigmoid / log(1 - sigmoid) (softplus form, no overflow)
    sp = jnp.log(1.0 + jnp.exp(-jnp.abs(sw)))
    log_sw = jnp.minimum(sw, 0.0) - sp
    log_nsw = jnp.minimum(-sw, 0.0) - sp

    rows = h.shape[0]
    pad = jnp.zeros((rows, OUT_SLAB - vocab - n_movies), f32)
    o_ref[...] = jnp.concatenate([lang_log + log_sw, rec_log + log_nsw, pad], axis=-1)


# ------------------------------ parameter init -------------------------------
def init_params(key):
    ks = jax.random.split(key, 20)

    def lin(k, fin, fout, scale=0.1):
        return (scale * jax.random.normal(k, (fin, fout), jnp.float32),
                jnp.zeros((fout,), jnp.float32))

    p = {}
    p["embedding"] = 0.1 * jax.random.normal(ks[0], (V, D_EMB), jnp.float32)
    p["sent_proj"] = lin(ks[1], D_EMB, 2 * SENT_HID)
    p["conv_proj"] = lin(ks[2], 2 * SENT_HID + 1, CONV_HID)
    p["lang_to_user"] = lin(ks[3], CONV_HID, USER_REP)        # language_to_user
    p["sa_proj"] = lin(ks[4], D_EMB, 1)                       # sentiment head
    p["autorec_enc"] = lin(ks[5], N_MOVIES, USER_REP)
    p["autorec_dec"] = lin(ks[6], USER_REP, N_MOVIES)
    p["prior_h0"] = lin(ks[7], CONV_HID, LATENT_SIZES[0])
    p["mu_prior"] = lin(ks[8], LATENT_SIZES[0], LATENT)
    p["sigma_prior"] = lin(ks[9], LATENT_SIZES[0], LATENT)
    # posterior heads exist as parameters (as in the module) but are NOT evaluated in
    # eval-mode forward (prior mu/logvar are used); a training-mode path would add them.
    p["post_h0"] = lin(ks[10], CONV_HID + 2 * SENT_HID + 1, LATENT_SIZES[0])
    p["mu_post"] = lin(ks[11], LATENT_SIZES[0], LATENT)
    p["sigma_post"] = lin(ks[12], LATENT_SIZES[0], LATENT)
    p["dec_emb2h"] = lin(ks[13], D_EMB, DEC_HID)
    p["dec_ctx2h"] = lin(ks[14], CONTEXT_SIZE, DEC_HID)
    p["dec_lang"] = lin(ks[15], DEC_HID, V)
    p["dec_switch"] = lin(ks[16], DEC_HID, 1)
    return p


# ------------------------------ Recommender.forward ---------------------------
def recommender_forward(params, input_dict, rng_key):
    dialogue = jnp.asarray(input_dict["dialogue"], jnp.int32)        # (B,C,U)
    senders_np = np.asarray(input_dict["senders"], np.float32)       # (B,C)
    lengths = np.asarray(input_dict["lengths"])                      # (B,C) host ints
    movie_occ = input_dict["movie_occurrences"]

    # ---------------- trace-time host constants (no device<->host sync in the jit) ------
    lengths_flat = lengths.reshape(-1)
    sorted_idx = np.argsort(-lengths_flat, kind="stable").astype(np.int32)
    rev = np.argsort(sorted_idx, kind="stable").astype(np.int32)
    num_pos = int(np.sum(lengths_flat > 0))

    tok_mask = (np.arange(U)[None, None, :] < lengths[..., None]).astype(np.float32)  # (B,C,U)
    len_div = np.maximum(lengths, 1).astype(np.float32)[..., None]                    # (B,C,1)
    t_col = (np.arange(B * C) % C).astype(np.float32).reshape(B * C, 1)               # turn idx

    # (conversation, movie) pairs; gating + selection + scatter folded into host matrices
    indices = [(i, mid) for i, d in enumerate(movie_occ) for mid in d]
    n_pairs = len(indices)
    has_movies = n_pairs > 0
    if has_movies:
        batch_ids = np.array([i for i, _ in indices], np.int32)
        movie_ids = np.array([m for _, m in indices], np.int32)
        flat_occ_np = np.stack([movie_occ[i][m] for i, m in indices]).astype(np.float32)  # (P,C,U)
        mentioned = flat_occ_np.sum(axis=2) > 0                                           # (P,C)
        gate_np = (np.cumsum(mentioned, axis=1) > 0).astype(np.float32)                   # (P,C)
        # sel[(b,t), (p,t')] = gate[p,t] * [t'==t] * [batch_ids[p]==b]
        sel_np = np.zeros((B * C, n_pairs * C), np.float32)
        for p in range(n_pairs):
            bconv = int(batch_ids[p])
            for t in range(C):
                sel_np[bconv * C + t, p * C + t] = gate_np[p, t]
        onehot_np = np.zeros((n_pairs * C, N_MOVIES), np.float32)
        onehot_np[np.arange(n_pairs * C), np.repeat(movie_ids, C)] = 1.0
    else:
        flat_occ_np = np.zeros((0, C, U), np.float32)

    @jax.jit
    def _fwd(params, dialogue, senders, flat_occ, key):
        f32 = jnp.float32
        emb_tab = params["embedding"]
        emb = emb_tab[dialogue]                                                    # (B,C,U,D)
        pooled = (jnp.sum(emb * tok_mask[..., None], axis=2) / len_div).reshape(B * C, D_EMB)
        # single packed activation operand: [pooled | sender | turn-index]
        act1 = jnp.concatenate(
            [pooled, senders.reshape(B * C, 1), jnp.asarray(t_col)], axis=1)       # (B*C, D+2)

        # ---------------- K1: fused encoder + latent prior ----------------
        w_musig = jnp.concatenate([params["mu_prior"][0], params["sigma_prior"][0]], axis=1)
        b_musig = jnp.concatenate([params["mu_prior"][1], params["sigma_prior"][1]])
        p1, offs1 = _pack_linear_slab([
            ("sent", params["sent_proj"][0], params["sent_proj"][1]),
            ("conv", params["conv_proj"][0], params["conv_proj"][1]),
            ("l2u", params["lang_to_user"][0], params["lang_to_user"][1]),
            ("prior", params["prior_h0"][0], params["prior_h0"][1]),
            ("musig", w_musig, b_musig),
        ])

        slab1 = pl.pallas_call(
            functools.partial(_encoder_latent_kernel, offs=offs1, turns=C),
            out_shape=jax.ShapeDtypeStruct((B * C, OUT_SLAB), f32),
            grid=(1,),
            in_specs=[_full(act1.shape), _full(p1.shape)],
            out_specs=_full((B * C, OUT_SLAB)),
            compiler_params=_PAR,
        )(act1, p1)

        user_rep = slab1[:, _UR0:_UR1]                       # (B*C, USER_REP), (b,t) order
        slab1_sorted = slab1[jnp.asarray(sorted_idx)][:num_pos]   # length-sort outside kernel
        conv_sorted = slab1_sorted[:, _CF0:_CF1]             # shifted + sorted conv reps
        mu = slab1_sorted[:, _MU0:_MU1]
        logvar = slab1_sorted[:, _LV0:_LV1]

        # ---------------- K2: fused sentiment + gated scatter + AutoRec ----------------
        if has_movies:
            emb_p = emb[jnp.asarray(batch_ids)]                                    # reuse gather
            occ_sum = jnp.sum(flat_occ, axis=2, keepdims=True)                     # (P,C,1)
            pooled_pc = (jnp.sum(emb_p * flat_occ[..., None], axis=2)
                         / jnp.maximum(occ_sum, 1.0)).reshape(n_pairs * C, D_EMB)  # (P*C, D)

            w_sa, b_sa = params["sa_proj"]
            p2, offs2 = _pack_linear_slab([
                ("sa", w_sa.T, jnp.pad(b_sa, (0, D_EMB - 1))),
                ("enc", params["autorec_enc"][0], params["autorec_enc"][1]),
                ("dec", params["autorec_dec"][0], params["autorec_dec"][1]),
            ])

            rec_slab = pl.pallas_call(
                functools.partial(_recommend_kernel, offs=offs2, n_movies=N_MOVIES),
                out_shape=jax.ShapeDtypeStruct((B * C, OUT_SLAB), f32),
                grid=(1,),
                in_specs=[_full((n_pairs * C, D_EMB)), _full((B * C, n_pairs * C)),
                          _full((n_pairs * C, N_MOVIES)), _full((B * C, USER_REP)),
                          _full(p2.shape)],
                out_specs=_full((B * C, OUT_SLAB)),
                compiler_params=_PAR,
            )(pooled_pc, jnp.asarray(sel_np), jnp.asarray(onehot_np), user_rep, p2)
            movie_rec = rec_slab[:, :N_MOVIES]                                     # (B*C, M)
        else:
            movie_rec = jnp.zeros((B * C, N_MOVIES), f32)    # reference behaviour

        # ---------------- decoder glue: shift/sort/truncate + latent sample ----------------
        sorted_j = jnp.asarray(sorted_idx)
        emb_tok = emb.reshape(B * C, U, D_EMB)[sorted_j][:num_pos].reshape(num_pos * U, D_EMB)
        std = jnp.exp(0.5 * logvar)
        eps = jax.random.normal(key, std.shape, f32)
        z = mu + eps * std                                   # eval mode: prior sample
        context = jnp.concatenate([conv_sorted, z], axis=1)                        # (R, CTX)
        rec3 = movie_rec.reshape(B, C, N_MOVIES)
        rec_shift = jnp.concatenate(
            [jnp.zeros((B, 1, N_MOVIES), f32), rec3[:, :C - 1]], axis=1).reshape(B * C, N_MOVIES)
        rec_sorted = rec_shift[sorted_j][:num_pos]                                 # (R, M)

        # ---------------- K3: fused decoder + switching log-softmax head ----------------
        w_e2h, b_e2h = params["dec_emb2h"]
        w_c2h, b_c2h = params["dec_ctx2h"]
        w_lang, b_lang = params["dec_lang"]
        w_sw, b_sw = params["dec_switch"]
        p3, offs3 = _pack_linear_slab([
            ("e2h", w_e2h, jnp.zeros((DEC_HID,), f32)),      # bias folded into c2h
            ("c2h", w_c2h, b_c2h + b_e2h),
            ("lang", w_lang, b_lang),
            ("sw", w_sw.T, jnp.pad(b_sw, (0, DEC_HID - 1))),
        ])

        dec_out = pl.pallas_call(
            functools.partial(_decoder_head_kernel, offs=offs3, vocab=V, n_movies=N_MOVIES),
            out_shape=jax.ShapeDtypeStruct((num_pos * U, OUT_SLAB), f32),
            grid=(num_pos,),
            in_specs=[pl.BlockSpec((U, D_EMB), lambda i: (i, 0)),   # per-step token block
                      _full((num_pos, CONTEXT_SIZE)),               # resident, row-sliced
                      _full((num_pos, N_MOVIES)),                   # resident, row-sliced
                      _full(p3.shape)],
            out_specs=pl.BlockSpec((U, OUT_SLAB), lambda i: (i, 0)),
            compiler_params=_PAR,                                    # 2 TCs on v7x
        )(emb_tok, context, rec_sorted, p3)

        out = dec_out[:, :V + N_MOVIES].reshape(num_pos, U, V + N_MOVIES)
        if num_pos < B * C:
            out = jnp.concatenate(
                [out, jnp.zeros((B * C - num_pos, U, V + N_MOVIES), f32)], axis=0)
        return out[jnp.asarray(rev)].reshape(B, C, U, V + N_MOVIES)

    return _fwd(params, dialogue, jnp.asarray(senders_np), jnp.asarray(flat_occ_np), rng_key)


# ------------------------------------ main ------------------------------------
if __name__ == "__main__":
    key = jax.random.PRNGKey(0)
    k_params, k_dlg, k_eps = jax.random.split(key, 3)
    params = init_params(k_params)

    dialogue = jax.random.randint(k_dlg, (B, C, U), 1, V, dtype=jnp.int32)
    senders = np.array([[1, -1, 1, -1], [-1, 1, 1, -1]], np.float32)
    lengths = np.array([[5, 4, 6, 0], [3, 7, 0, 0]], np.int32)           # some empty turns
    conversation_lengths = np.array([3, 2], np.int32)

    occ_b0_m1 = np.zeros((C, U), np.float32); occ_b0_m1[0, 2] = 1.0
    occ_b0_m5 = np.zeros((C, U), np.float32); occ_b0_m5[2, 1] = 1.0; occ_b0_m5[2, 5] = 1.0
    occ_b1_m3 = np.zeros((C, U), np.float32); occ_b1_m3[1, 3] = 1.0
    movie_occurrences = [{1: occ_b0_m1, 5: occ_b0_m5}, {3: occ_b1_m3}]

    input_dict = {
        "dialogue": dialogue,
        "senders": senders,
        "lengths": lengths,
        "conversation_lengths": conversation_lengths,
        "movie_occurrences": movie_occurrences,
    }

    out = recommender_forward(params, input_dict, k_eps)
    out = jax.block_until_ready(out)
    assert out.shape == (B, C, U, V + N_MOVIES)
    assert bool(jnp.all(jnp.isfinite(out)))
    print("KERNEL_OK")
</pallas_src>

<mosaic_0001>
module attributes {stable_mosaic.version = 11 : i64} {
  func.func @_encoder_latent_kernel(%arg0: i32, %arg1: memref<8x18xf32, #tpu.memory_space<vmem>>, %arg2: memref<152x32xf32, #tpu.memory_space<vmem>>, %arg3: memref<8x128xf32, #tpu.memory_space<vmem>>) attributes {dimension_semantics = [#tpu.dimension_semantics<parallel>], iteration_bounds = array<i64: 1>, scalar_prefetch = 0 : i64, scratch_operands = 0 : i64, tpu.core_type = #tpu.core_type<tc>, window_params = [{pipeline_mode = #tpu.pipeline_mode<synchronous>, transform_indices = @transform_0, window_bounds = array<i64: 8, 18>}, {pipeline_mode = #tpu.pipeline_mode<synchronous>, transform_indices = @transform_1, window_bounds = array<i64: 152, 32>}, {pipeline_mode = #tpu.pipeline_mode<synchronous>, transform_indices = @transform_2, window_bounds = array<i64: 8, 128>}]} {
    %c0 = arith.constant 0 : index
    %c0_0 = arith.constant 0 : index
    %0 = vector.load %arg1[%c0, %c0_0] : memref<8x18xf32, #tpu.memory_space<vmem>>, vector<8x16xf32>
    %c0_1 = arith.constant 0 : index
    %c16 = arith.constant 16 : index
    %1 = vector.load %arg1[%c0_1, %c16] : memref<8x18xf32, #tpu.memory_space<vmem>>, vector<8x1xf32>
    %c0_2 = arith.constant 0 : index
    %c17 = arith.constant 17 : index
    %2 = vector.load %arg1[%c0_2, %c17] : memref<8x18xf32, #tpu.memory_space<vmem>>, vector<8x1xf32>
    %c0_3 = arith.constant 0 : index
    %c0_4 = arith.constant 0 : index
    %3 = vector.load %arg2[%c0_3, %c0_4] : memref<152x32xf32, #tpu.memory_space<vmem>>, vector<16x16xf32>
    %c16_5 = arith.constant 16 : index
    %c0_6 = arith.constant 0 : index
    %4 = vector.load %arg2[%c16_5, %c0_6] : memref<152x32xf32, #tpu.memory_space<vmem>>, vector<1x16xf32>
    %cst = arith.constant dense<0.000000e+00> : vector<8x16xf32>
    %5 = tpu.matmul %0, %3, %cst {dimension_numbers = #tpu.dot_dimension_numbers<[1], [0], [0], [1], [0, 0, 1, 1], [], []>} : vector<8x16xf32>, vector<16x16xf32>, vector<8x16xf32> -> vector<8x16xf32>
    %6 = vector.broadcast %4 : vector<1x16xf32> to vector<8x16xf32>
    %7 = arith.addf %5, %6 : vector<8x16xf32>
    %8 = math.tanh %7 : vector<8x16xf32>
    %9 = tpu.concatenate %8, %1 in 1 : vector<8x16xf32>, vector<8x1xf32> -> vector<8x17xf32>
    %cst_7 = arith.constant 1.000000e+00 : f32
    %10 = vector.broadcast %cst_7 : f32 to vector<8x1xf32>
    %11 = arith.cmpf oge, %2, %10 : vector<8x1xf32>
    %c1_i32 = arith.constant 1 : i32
    %12 = tpu.dynamic_rotate %9 by %c1_i32 dim 0 : vector<8x17xf32>, i32 -> vector<8x17xf32>
    %cst_8 = arith.constant 0.000000e+00 : f32
    %13 = vector.shape_cast %11 : vector<8x1xi1> to vector<8x1xi1>
    %14 = vector.broadcast %13 : vector<8x1xi1> to vector<8x17xi1>
    %15 = vector.broadcast %cst_8 : f32 to vector<8x17xf32>
    %16 = arith.select %14, %12, %15 : vector<8x17xi1>, vector<8x17xf32>
    %17 = arith.addf %9, %16 : vector<8x17xf32>
    %cst_9 = arith.constant 2.000000e+00 : f32
    %18 = vector.broadcast %cst_9 : f32 to vector<8x1xf32>
    %19 = arith.cmpf oge, %2, %18 : vector<8x1xf32>
    %c2_i32 = arith.constant 2 : i32
    %20 = tpu.dynamic_rotate %9 by %c2_i32 dim 0 : vector<8x17xf32>, i32 -> vector<8x17xf32>
    %cst_10 = arith.constant 0.000000e+00 : f32
    %21 = vector.shape_cast %19 : vector<8x1xi1> to vector<8x1xi1>
    %22 = vector.broadcast %21 : vector<8x1xi1> to vector<8x17xi1>
    %23 = vector.broadcast %cst_10 : f32 to vector<8x17xf32>
    %24 = arith.select %22, %20, %23 : vector<8x17xi1>, vector<8x17xf32>
    %25 = arith.addf %17, %24 : vector<8x17xf32>
    %cst_11 = arith.constant 3.000000e+00 : f32
    %26 = vector.broadcast %cst_11 : f32 to vector<8x1xf32>
    %27 = arith.cmpf oge, %2, %26 : vector<8x1xf32>
    %c3_i32 = arith.constant 3 : i32
    %28 = tpu.dynamic_rotate %9 by %c3_i32 dim 0 : vector<8x17xf32>, i32 -> vector<8x17xf32>
    %cst_12 = arith.constant 0.000000e+00 : f32
    %29 = vector.shape_cast %27 : vector<8x1xi1> to vector<8x1xi1>
    %30 = vector.broadcast %29 : vector<8x1xi1> to vector<8x17xi1>
    %31 = vector.broadcast %cst_12 : f32 to vector<8x17xf32>
    %32 = arith.select %30, %28, %31 : vector<8x17xi1>, vector<8x17xf32>
    %33 = arith.addf %25, %32 : vector<8x17xf32>
    %cst_13 = arith.constant 1.000000e+00 : f32
    %34 = vector.broadcast %cst_13 : f32 to vector<8x1xf32>
    %35 = arith.addf %2, %34 : vector<8x1xf32>
    %36 = vector.broadcast %35 : vector<8x1xf32> to vector<8x17xf32>
    %37 = arith.divf %33, %36 : vector<8x17xf32>
    %c24 = arith.constant 24 : index
    %c0_14 = arith.constant 0 : index
    %38 = vector.load %arg2[%c24, %c0_14] : memref<152x32xf32, #tpu.memory_space<vmem>>, vector<17x32xf32>
    %c41 = arith.constant 41 : index
    %c0_15 = arith.constant 0 : index
    %39 = vector.load %arg2[%c41, %c0_15] : memref<152x32xf32, #tpu.memory_space<vmem>>, vector<1x32xf32>
    %cst_16 = arith.constant dense<0.000000e+00> : vector<8x32xf32>
    %40 = tpu.matmul %37, %38, %cst_16 {dimension_numbers = #tpu.dot_dimension_numbers<[1], [0], [0], [1], [0, 0, 1, 1], [], []>} : vector<8x17xf32>, vector<17x32xf32>, vector<8x32xf32> -> vector<8x32xf32>
    %41 = vector.broadcast %39 : vector<1x32xf32> to vector<8x32xf32>
    %42 = arith.addf %40, %41 : vector<8x32xf32>
    %43 = math.tanh %42 : vector<8x32xf32>
    %c48 = arith.constant 48 : index
    %c0_17 = arith.constant 0 : index
    %44 = vector.load %arg2[%c48, %c0_17] : memref<152x32xf32, #tpu.memory_space<vmem>>, vector<32x24xf32>
    %c80 = arith.constant 80 : index
    %c0_18 = arith.constant 0 : index
    %45 = vector.load %arg2[%c80, %c0_18] : memref<152x32xf32, #tpu.memory_space<vmem>>, vector<1x24xf32>
    %cst_19 = arith.constant dense<0.000000e+00> : vector<8x24xf32>
    %46 = tpu.matmul %43, %44, %cst_19 {dimension_numbers = #tpu.dot_dimension_numbers<[1], [0], [0], [1], [0, 0, 1, 1], [], []>} : vector<8x32xf32>, vector<32x24xf32>, vector<8x24xf32> -> vector<8x24xf32>
    %47 = vector.broadcast %45 : vector<1x24xf32> to vector<8x24xf32>
    %48 = arith.addf %46, %47 : vector<8x24xf32>
    %cst_20 = arith.constant 1.000000e+00 : f32
    %49 = vector.broadcast %cst_20 : f32 to vector<8x1xf32>
    %50 = arith.cmpf oge, %2, %49 : vector<8x1xf32>
    %c1_i32_21 = arith.constant 1 : i32
    %51 = tpu.dynamic_rotate %43 by %c1_i32_21 dim 0 : vector<8x32xf32>, i32 -> vector<8x32xf32>
    %cst_22 = arith.constant 0.000000e+00 : f32
    %52 = vector.shape_cast %50 : vector<8x1xi1> to vector<8x1xi1>
    %53 = vector.broadcast %52 : vector<8x1xi1> to vector<8x32xi1>
    %54 = vector.broadcast %cst_22 : f32 to vector<8x32xf32>
    %55 = arith.select %53, %51, %54 : vector<8x32xi1>, vector<8x32xf32>
    %c88 = arith.constant 88 : index
    %c0_23 = arith.constant 0 : index
    %56 = vector.load %arg2[%c88, %c0_23] : memref<152x32xf32, #tpu.memory_space<vmem>>, vector<32x16xf32>
    %c120 = arith.constant 120 : index
    %c0_24 = arith.constant 0 : index
    %57 = vector.load %arg2[%c120, %c0_24] : memref<152x32xf32, #tpu.memory_space<vmem>>, vector<1x16xf32>
    %cst_25 = arith.constant dense<0.000000e+00> : vector<8x16xf32>
    %58 = tpu.matmul %55, %56, %cst_25 {dimension_numbers = #tpu.dot_dimension_numbers<[1], [0], [0], [1], [0, 0, 1, 1], [], []>} : vector<8x32xf32>, vector<32x16xf32>, vector<8x16xf32> -> vector<8x16xf32>
    %59 = vector.broadcast %57 : vector<1x16xf32> to vector<8x16xf32>
    %60 = arith.addf %58, %59 : vector<8x16xf32>
    %cst_26 = arith.constant 0.000000e+00 : f32
    %61 = vector.broadcast %cst_26 : f32 to vector<8x16xf32>
    %62 = arith.maximumf %60, %61 : vector<8x16xf32>
    %c128 = arith.constant 128 : index
    %c0_27 = arith.constant 0 : index
    %63 = vector.load %arg2[%c128, %c0_27] : memref<152x32xf32, #tpu.memory_space<vmem>>, vector<16x16xf32>
    %c144 = arith.constant 144 : index
    %c0_28 = arith.constant 0 : index
    %64 = vector.load %arg2[%c144, %c0_28] : memref<152x32xf32, #tpu.memory_space<vmem>>, vector<1x16xf32>
    %cst_29 = arith.constant dense<0.000000e+00> : vector<8x16xf32>
    %65 = tpu.matmul %62, %63, %cst_29 {dimension_numbers = #tpu.dot_dimension_numbers<[1], [0], [0], [1], [0, 0, 1, 1], [], []>} : vector<8x16xf32>, vector<16x16xf32>, vector<8x16xf32> -> vector<8x16xf32>
    %66 = vector.broadcast %64 : vector<1x16xf32> to vector<8x16xf32>
    %67 = arith.addf %65, %66 : vector<8x16xf32>
    %cst_30 = arith.constant 0.000000e+00 : f32
    %68 = vector.broadcast %cst_30 : f32 to vector<8x56xf32>
    %69 = tpu.concatenate %55, %48, %67, %68 in 1 : vector<8x32xf32>, vector<8x24xf32>, vector<8x16xf32>, vector<8x56xf32> -> vector<8x128xf32>
    %c0_31 = arith.constant 0 : index
    %c0_32 = arith.constant 0 : index
    %70 = vector.load %arg3[%c0_31, %c0_32] : memref<8x128xf32, #tpu.memory_space<vmem>>, vector<8x128xf32>
    tpu.vector_store %arg3[%c0_31, %c0_32], %69 {strides = array<i32>} : memref<8x128xf32, #tpu.memory_space<vmem>>, vector<8x128xf32>,
    return
  }
  func.func @transform_0(%arg0: i32) -> (i32, i32) {
    %c0_i32 = arith.constant 0 : i32
    %c0_i32_0 = arith.constant 0 : i32
    %c0_i32_1 = arith.constant 0 : i32
    return %c0_i32, %c0_i32_0 : i32, i32
  }
  func.func @transform_1(%arg0: i32) -> (i32, i32) {
    %c0_i32 = arith.constant 0 : i32
    %c0_i32_0 = arith.constant 0 : i32
    %c0_i32_1 = arith.constant 0 : i32
    return %c0_i32, %c0_i32_0 : i32, i32
  }
  func.func @transform_2(%arg0: i32) -> (i32, i32) {
    %c0_i32 = arith.constant 0 : i32
    %c0_i32_0 = arith.constant 0 : i32
    %c0_i32_1 = arith.constant 0 : i32
    return %c0_i32, %c0_i32_0 : i32, i32
  }
}

module attributes {stable_mosaic.version = 11 : i64} {
  func.func @_recommend_kernel(%arg0: i32, %arg1: memref<12x16xf32, #tpu.memory_space<vmem>>, %arg2: memref<8x12xf32, #tpu.memory_space<vmem>>, %arg3: memref<12x16xf32, #tpu.memory_space<vmem>>, %arg4: memref<8x24xf32, #tpu.memory_space<vmem>>, %arg5: memref<64x24xf32, #tpu.memory_space<vmem>>, %arg6: memref<8x128xf32, #tpu.memory_space<vmem>>) attributes {dimension_semantics = [#tpu.dimension_semantics<parallel>], iteration_bounds = array<i64: 1>, scalar_prefetch = 0 : i64, scratch_operands = 0 : i64, tpu.core_type = #tpu.core_type<tc>, window_params = [{pipeline_mode = #tpu.pipeline_mode<synchronous>, transform_indices = @transform_0, window_bounds = array<i64: 12, 16>}, {pipeline_mode = #tpu.pipeline_mode<synchronous>, transform_indices = @transform_1, window_bounds = array<i64: 8, 12>}, {pipeline_mode = #tpu.pipeline_mode<synchronous>, transform_indices = @transform_2, window_bounds = array<i64: 12, 16>}, {pipeline_mode = #tpu.pipeline_mode<synchronous>, transform_indices = @transform_3, window_bounds = array<i64: 8, 24>}, {pipeline_mode = #tpu.pipeline_mode<synchronous>, transform_indices = @transform_4, window_bounds = array<i64: 64, 24>}, {pipeline_mode = #tpu.pipeline_mode<synchronous>, transform_indices = @transform_5, window_bounds = array<i64: 8, 128>}]} {
    %c0 = arith.constant 0 : index
    %c0_0 = arith.constant 0 : index
    %0 = vector.load %arg5[%c0, %c0_0] : memref<64x24xf32, #tpu.memory_space<vmem>>, vector<1x16xf32>
    %c1 = arith.constant 1 : index
    %c0_1 = arith.constant 0 : index
    %1 = vector.load %arg5[%c1, %c0_1] : memref<64x24xf32, #tpu.memory_space<vmem>>, vector<1x16xf32>
    %c0_2 = arith.constant 0 : index
    %c0_3 = arith.constant 0 : index
    %2 = vector.load %arg1[%c0_2, %c0_3] : memref<12x16xf32, #tpu.memory_space<vmem>>, vector<12x16xf32>
    %3 = vector.broadcast %0 : vector<1x16xf32> to vector<12x16xf32>
    %4 = arith.mulf %2, %3 : vector<12x16xf32>
    %cst = arith.constant dense<0.000000e+00> : vector<12xf32>
    %5 = vector.multi_reduction <add>, %4, %cst [1] : vector<12x16xf32> to vector<12xf32>
    %6 = vector.shape_cast %5 : vector<12xf32> to vector<12x1xf32>
    %7 = vector.extract_strided_slice %1 {offsets = [0, 0], sizes = [1, 1], strides = [1, 1]} : vector<1x16xf32> to vector<1x1xf32>
    %8 = vector.broadcast %7 : vector<1x1xf32> to vector<12x1xf32>
    %9 = arith.addf %6, %8 : vector<12x1xf32>
    %cst_4 = arith.constant 0.000000e+00 : f32
    %10 = vector.broadcast %cst_4 : f32 to vector<12x1xf32>
    %11 = arith.subf %10, %9 : vector<12x1xf32>
    %12 = math.exp %11 : vector<12x1xf32>
    %cst_5 = arith.constant 1.000000e+00 : f32
    %13 = vector.broadcast %cst_5 : f32 to vector<12x1xf32>
    %14 = arith.addf %13, %12 : vector<12x1xf32>
    %15 = tpu.reciprocal %14 {approx = true} : vector<12x1xf32> -> vector<12x1xf32>
    %c0_6 = arith.constant 0 : index
    %c0_7 = arith.constant 0 : index
    %16 = vector.load %arg2[%c0_6, %c0_7] : memref<8x12xf32, #tpu.memory_space<vmem>>, vector<8x12xf32>
    %c0_8 = arith.constant 0 : index
    %c0_9 = arith.constant 0 : index
    %17 = vector.load %arg3[%c0_8, %c0_9] : memref<12x16xf32, #tpu.memory_space<vmem>>, vector<12x16xf32>
    %18 = vector.broadcast %15 : vector<12x1xf32> to vector<12x16xf32>
    %19 = arith.mulf %18, %17 : vector<12x16xf32>
    %cst_10 = arith.constant dense<0.000000e+00> : vector<8x16xf32>
    %20 = tpu.matmul %16, %19, %cst_10 {dimension_numbers = #tpu.dot_dimension_numbers<[1], [0], [0], [1], [0, 0, 1, 1], [], []>} : vector<8x12xf32>, vector<12x16xf32>, vector<8x16xf32> -> vector<8x16xf32>
    %c8 = arith.constant 8 : index
    %c0_11 = arith.constant 0 : index
    %21 = vector.load %arg5[%c8, %c0_11] : memref<64x24xf32, #tpu.memory_space<vmem>>, vector<16x24xf32>
    %c24 = arith.constant 24 : index
    %c0_12 = arith.constant 0 : index
    %22 = vector.load %arg5[%c24, %c0_12] : memref<64x24xf32, #tpu.memory_space<vmem>>, vector<1x24xf32>
    %cst_13 = arith.constant dense<0.000000e+00> : vector<8x24xf32>
    %23 = tpu.matmul %20, %21, %cst_13 {dimension_numbers = #tpu.dot_dimension_numbers<[1], [0], [0], [1], [0, 0, 1, 1], [], []>} : vector<8x16xf32>, vector<16x24xf32>, vector<8x24xf32> -> vector<8x24xf32>
    %24 = vector.broadcast %22 : vector<1x24xf32> to vector<8x24xf32>
    %25 = arith.addf %23, %24 : vector<8x24xf32>
    %c0_14 = arith.constant 0 : index
    %c0_15 = arith.constant 0 : index
    %26 = vector.load %arg4[%c0_14, %c0_15] : memref<8x24xf32, #tpu.memory_space<vmem>>, vector<8x24xf32>
    %27 = arith.addf %25, %26 : vector<8x24xf32>
    %cst_16 = arith.constant 0.000000e+00 : f32
    %28 = vector.broadcast %cst_16 : f32 to vector<8x24xf32>
    %29 = arith.subf %28, %27 : vector<8x24xf32>
    %30 = math.exp %29 : vector<8x24xf32>
    %cst_17 = arith.constant 1.000000e+00 : f32
    %31 = vector.broadcast %cst_17 : f32 to vector<8x24xf32>
    %32 = arith.addf %31, %30 : vector<8x24xf32>
    %33 = tpu.reciprocal %32 {approx = true} : vector<8x24xf32> -> vector<8x24xf32>
    %c32 = arith.constant 32 : index
    %c0_18 = arith.constant 0 : index
    %34 = vector.load %arg5[%c32, %c0_18] : memref<64x24xf32, #tpu.memory_space<vmem>>, vector<24x16xf32>
    %c56 = arith.constant 56 : index
    %c0_19 = arith.constant 0 : index
    %35 = vector.load %arg5[%c56, %c0_19] : memref<64x24xf32, #tpu.memory_space<vmem>>, vector<1x16xf32>
    %cst_20 = arith.constant dense<0.000000e+00> : vector<8x16xf32>
    %36 = tpu.matmul %33, %34, %cst_20 {dimension_numbers = #tpu.dot_dimension_numbers<[1], [0], [0], [1], [0, 0, 1, 1], [], []>} : vector<8x24xf32>, vector<24x16xf32>, vector<8x16xf32> -> vector<8x16xf32>
    %37 = vector.broadcast %35 : vector<1x16xf32> to vector<8x16xf32>
    %38 = arith.addf %36, %37 : vector<8x16xf32>
    %cst_21 = arith.constant 0.000000e+00 : f32
    %39 = vector.broadcast %cst_21 : f32 to vector<8x112xf32>
    %40 = tpu.concatenate %38, %39 in 1 : vector<8x16xf32>, vector<8x112xf32> -> vector<8x128xf32>
    %c0_22 = arith.constant 0 : index
    %c0_23 = arith.constant 0 : index
    %41 = vector.load %arg6[%c0_22, %c0_23] : memref<8x128xf32, #tpu.memory_space<vmem>>, vector<8x128xf32>
    tpu.vector_store %arg6[%c0_22, %c0_23], %40 {strides = array<i32>} : memref<8x128xf32, #tpu.memory_space<vmem>>, vector<8x128xf32>,
    return
  }
  func.func @transform_0(%arg0: i32) -> (i32, i32) {
    %c0_i32 = arith.constant 0 : i32
    %c0_i32_0 = arith.constant 0 : i32
    %c0_i32_1 = arith.constant 0 : i32
    return %c0_i32, %c0_i32_0 : i32, i32
  }
  func.func @transform_1(%arg0: i32) -> (i32, i32) {
    %c0_i32 = arith.constant 0 : i32
    %c0_i32_0 = arith.constant 0 : i32
    %c0_i32_1 = arith.constant 0 : i32
    return %c0_i32, %c0_i32_0 : i32, i32
  }
  func.func @transform_2(%arg0: i32) -> (i32, i32) {
    %c0_i32 = arith.constant 0 : i32
    %c0_i32_0 = arith.constant 0 : i32
    %c0_i32_1 = arith.constant 0 : i32
    return %c0_i32, %c0_i32_0 : i32, i32
  }
  func.func @transform_3(%arg0: i32) -> (i32, i32) {
    %c0_i32 = arith.constant 0 : i32
    %c0_i32_0 = arith.constant 0 : i32
    %c0_i32_1 = arith.constant 0 : i32
    return %c0_i32, %c0_i32_0 : i32, i32
  }
  func.func @transform_4(%arg0: i32) -> (i32, i32) {
    %c0_i32 = arith.constant 0 : i32
    %c0_i32_0 = arith.constant 0 : i32
    %c0_i32_1 = arith.constant 0 : i32
    return %c0_i32, %c0_i32_0 : i32, i32
  }
  func.func @transform_5(%arg0: i32) -> (i32, i32) {
    %c0_i32 = arith.constant 0 : i32
    %c0_i32_0 = arith.constant 0 : i32
    %c0_i32_1 = arith.constant 0 : i32
    return %c0_i32, %c0_i32_0 : i32, i32
  }
}

module attributes {stable_mosaic.version = 11 : i64} {
  func.func @_decoder_head_kernel(%arg0: i32, %arg1: memref<8x16xf32, #tpu.memory_space<vmem>>, %arg2: memref<5x40xf32, #tpu.memory_space<vmem>>, %arg3: memref<5x16xf32, #tpu.memory_space<vmem>>, %arg4: memref<120x32xf32, #tpu.memory_space<vmem>>, %arg5: memref<8x128xf32, #tpu.memory_space<vmem>>) attributes {dimension_semantics = [#tpu.dimension_semantics<parallel>], iteration_bounds = array<i64: 5>, scalar_prefetch = 0 : i64, scratch_operands = 0 : i64, tpu.core_type = #tpu.core_type<tc>, window_params = [{transform_indices = @transform_0, window_bounds = array<i64: 8, 16>}, {pipeline_mode = #tpu.pipeline_mode<synchronous>, transform_indices = @transform_1, window_bounds = array<i64: 5, 40>}, {pipeline_mode = #tpu.pipeline_mode<synchronous>, transform_indices = @transform_2, window_bounds = array<i64: 5, 16>}, {pipeline_mode = #tpu.pipeline_mode<synchronous>, transform_indices = @transform_3, window_bounds = array<i64: 120, 32>}, {transform_indices = @transform_4, window_bounds = array<i64: 8, 128>}]} {
    %0 = arith.index_cast %arg0 : i32 to index
    %c0 = arith.constant 0 : index
    %1 = vector.load %arg2[%0, %c0] : memref<5x40xf32, #tpu.memory_space<vmem>>, vector<1x40xf32>
    %2 = arith.index_cast %arg0 : i32 to index
    %c0_0 = arith.constant 0 : index
    %3 = vector.load %arg3[%2, %c0_0] : memref<5x16xf32, #tpu.memory_space<vmem>>, vector<1x16xf32>
    %c24 = arith.constant 24 : index
    %c0_1 = arith.constant 0 : index
    %4 = vector.load %arg4[%c24, %c0_1] : memref<120x32xf32, #tpu.memory_space<vmem>>, vector<40x32xf32>
    %c64 = arith.constant 64 : index
    %c0_2 = arith.constant 0 : index
    %5 = vector.load %arg4[%c64, %c0_2] : memref<120x32xf32, #tpu.memory_space<vmem>>, vector<1x32xf32>
    %cst = arith.constant dense<0.000000e+00> : vector<1x32xf32>
    %6 = tpu.matmul %1, %4, %cst {dimension_numbers = #tpu.dot_dimension_numbers<[1], [0], [0], [1], [0, 0, 1, 1], [], []>} : vector<1x40xf32>, vector<40x32xf32>, vector<1x32xf32> -> vector<1x32xf32>
    %7 = arith.addf %6, %5 : vector<1x32xf32>
    %c0_3 = arith.constant 0 : index
    %c0_4 = arith.constant 0 : index
    %8 = vector.load %arg4[%c0_3, %c0_4] : memref<120x32xf32, #tpu.memory_space<vmem>>, vector<16x32xf32>
    %c0_5 = arith.constant 0 : index
    %c0_6 = arith.constant 0 : index
    %9 = vector.load %arg1[%c0_5, %c0_6] : memref<8x16xf32, #tpu.memory_space<vmem>>, vector<8x16xf32>
    %cst_7 = arith.constant dense<0.000000e+00> : vector<8x32xf32>
    %10 = tpu.matmul %9, %8, %cst_7 {dimension_numbers = #tpu.dot_dimension_numbers<[1], [0], [0], [1], [0, 0, 1, 1], [], []>} : vector<8x16xf32>, vector<16x32xf32>, vector<8x32xf32> -> vector<8x32xf32>
    %11 = vector.broadcast %7 : vector<1x32xf32> to vector<8x32xf32>
    %12 = arith.addf %10, %11 : vector<8x32xf32>
    %13 = math.tanh %12 : vector<8x32xf32>
    %c72 = arith.constant 72 : index
    %c0_8 = arith.constant 0 : index
    %14 = vector.load %arg4[%c72, %c0_8] : memref<120x32xf32, #tpu.memory_space<vmem>>, vector<32x32xf32>
    %c104 = arith.constant 104 : index
    %c0_9 = arith.constant 0 : index
    %15 = vector.load %arg4[%c104, %c0_9] : memref<120x32xf32, #tpu.memory_space<vmem>>, vector<1x32xf32>
    %cst_10 = arith.constant dense<0.000000e+00> : vector<8x32xf32>
    %16 = tpu.matmul %13, %14, %cst_10 {dimension_numbers = #tpu.dot_dimension_numbers<[1], [0], [0], [1], [0, 0, 1, 1], [], []>} : vector<8x32xf32>, vector<32x32xf32>, vector<8x32xf32> -> vector<8x32xf32>
    %17 = vector.broadcast %15 : vector<1x32xf32> to vector<8x32xf32>
    %18 = arith.addf %16, %17 : vector<8x32xf32>
    %cst_11 = arith.constant dense<0xFF800000> : vector<8xf32>
    %19 = vector.multi_reduction <maximumf>, %18, %cst_11 [1] : vector<8x32xf32> to vector<8xf32>
    %20 = vector.shape_cast %19 : vector<8xf32> to vector<8x1xf32>
    %21 = vector.broadcast %20 : vector<8x1xf32> to vector<8x32xf32>
    %22 = arith.subf %18, %21 : vector<8x32xf32>
    %23 = math.exp %22 : vector<8x32xf32>
    %cst_12 = arith.constant dense<0.000000e+00> : vector<8xf32>
    %24 = vector.multi_reduction <add>, %23, %cst_12 [1] : vector<8x32xf32> to vector<8xf32>
    %25 = vector.shape_cast %24 : vector<8xf32> to vector<8x1xf32>
    %26 = math.log %25 : vector<8x1xf32>
    %27 = vector.broadcast %26 : vector<8x1xf32> to vector<8x32xf32>
    %28 = arith.subf %22, %27 : vector<8x32xf32>
    %cst_13 = arith.constant dense<0xFF800000> : vector<1xf32>
    %29 = vector.multi_reduction <maximumf>, %3, %cst_13 [1] : vector<1x16xf32> to vector<1xf32>
    %30 = vector.shape_cast %29 : vector<1xf32> to vector<1x1xf32>
    %31 = vector.broadcast %30 : vector<1x1xf32> to vector<1x16xf32>
    %32 = arith.subf %3, %31 : vector<1x16xf32>
    %33 = math.exp %32 : vector<1x16xf32>
    %cst_14 = arith.constant dense<0.000000e+00> : vector<1xf32>
    %34 = vector.multi_reduction <add>, %33, %cst_14 [1] : vector<1x16xf32> to vector<1xf32>
    %35 = vector.shape_cast %34 : vector<1xf32> to vector<1x1xf32>
    %36 = math.log %35 : vector<1x1xf32>
    %37 = vector.broadcast %36 : vector<1x1xf32> to vector<1x16xf32>
    %38 = arith.subf %32, %37 : vector<1x16xf32>
    %c112 = arith.constant 112 : index
    %c0_15 = arith.constant 0 : index
    %39 = vector.load %arg4[%c112, %c0_15] : memref<120x32xf32, #tpu.memory_space<vmem>>, vector<1x32xf32>
    %c113 = arith.constant 113 : index
    %c0_16 = arith.constant 0 : index
    %40 = vector.load %arg4[%c113, %c0_16] : memref<120x32xf32, #tpu.memory_space<vmem>>, vector<1x32xf32>
    %41 = vector.broadcast %39 : vector<1x32xf32> to vector<8x32xf32>
    %42 = arith.mulf %13, %41 : vector<8x32xf32>
    %cst_17 = arith.constant dense<0.000000e+00> : vector<8xf32>
    %43 = vector.multi_reduction <add>, %42, %cst_17 [1] : vector<8x32xf32> to vector<8xf32>
    %44 = vector.shape_cast %43 : vector<8xf32> to vector<8x1xf32>
    %45 = vector.extract_strided_slice %40 {offsets = [0, 0], sizes = [1, 1], strides = [1, 1]} : vector<1x32xf32> to vector<1x1xf32>
    %46 = vector.broadcast %45 : vector<1x1xf32> to vector<8x1xf32>
    %47 = arith.addf %44, %46 : vector<8x1xf32>
    %48 = math.absf %47 : vector<8x1xf32>
    %cst_18 = arith.constant 0.000000e+00 : f32
    %49 = vector.broadcast %cst_18 : f32 to vector<8x1xf32>
    %50 = arith.subf %49, %48 : vector<8x1xf32>
    %51 = math.exp %50 : vector<8x1xf32>
    %cst_19 = arith.constant 1.000000e+00 : f32
    %52 = vector.broadcast %cst_19 : f32 to vector<8x1xf32>
    %53 = arith.addf %52, %51 : vector<8x1xf32>
    %54 = math.log %53 : vector<8x1xf32>
    %cst_20 = arith.constant 0.000000e+00 : f32
    %55 = vector.broadcast %cst_20 : f32 to vector<8x1xf32>
    %56 = arith.minimumf %47, %55 : vector<8x1xf32>
    %57 = arith.subf %56, %54 : vector<8x1xf32>
    %cst_21 = arith.constant 0.000000e+00 : f32
    %58 = vector.broadcast %cst_21 : f32 to vector<8x1xf32>
    %59 = arith.subf %58, %47 : vector<8x1xf32>
    %cst_22 = arith.constant 0.000000e+00 : f32
    %60 = vector.broadcast %cst_22 : f32 to vector<8x1xf32>
    %61 = arith.minimumf %59, %60 : vector<8x1xf32>
    %62 = arith.subf %61, %54 : vector<8x1xf32>
    %cst_23 = arith.constant 0.000000e+00 : f32
    %63 = vector.broadcast %cst_23 : f32 to vector<8x80xf32>
    %64 = vector.broadcast %57 : vector<8x1xf32> to vector<8x32xf32>
    %65 = arith.addf %28, %64 : vector<8x32xf32>
    %66 = vector.broadcast %38 : vector<1x16xf32> to vector<8x16xf32>
    %67 = vector.broadcast %62 : vector<8x1xf32> to vector<8x16xf32>
    %68 = arith.addf %66, %67 : vector<8x16xf32>
    %69 = tpu.concatenate %65, %68, %63 in 1 : vector<8x32xf32>, vector<8x16xf32>, vector<8x80xf32> -> vector<8x128xf32>
    %c0_24 = arith.constant 0 : index
    %c0_25 = arith.constant 0 : index
    %70 = vector.load %arg5[%c0_24, %c0_25] : memref<8x128xf32, #tpu.memory_space<vmem>>, vector<8x128xf32>
    tpu.vector_store %arg5[%c0_24, %c0_25], %69 {strides = array<i32>} : memref<8x128xf32, #tpu.memory_space<vmem>>, vector<8x128xf32>,
    return
  }
  func.func @transform_0(%arg0: i32) -> (i32, i32) {
    %c0_i32 = arith.constant 0 : i32
    %c0_i32_0 = arith.constant 0 : i32
    return %arg0, %c0_i32 : i32, i32
  }
  func.func @transform_1(%arg0: i32) -> (i32, i32) {
    %c0_i32 = arith.constant 0 : i32
    %c0_i32_0 = arith.constant 0 : i32
    %c0_i32_1 = arith.constant 0 : i32
    return %c0_i32, %c0_i32_0 : i32, i32
  }
  func.func @transform_2(%arg0: i32) -> (i32, i32) {
    %c0_i32 = arith.constant 0 : i32
    %c0_i32_0 = arith.constant 0 : i32
    %c0_i32_1 = arith.constant 0 : i32
    return %c0_i32, %c0_i32_0 : i32, i32
  }
  func.func @transform_3(%arg0: i32) -> (i32, i32) {
    %c0_i32 = arith.constant 0 : i32
    %c0_i32_0 = arith.constant 0 : i32
    %c0_i32_1 = arith.constant 0 : i32
    return %c0_i32, %c0_i32_0 : i32, i32
  }
  func.func @transform_4(%arg0: i32) -> (i32, i32) {
    %c0_i32 = arith.constant 0 : i32
    %c0_i32_0 = arith.constant 0 : i32
    return %arg0, %c0_i32 : i32, i32
  }
}

</mosaic_0001>

<bundles_post_ra>
// kernel: _fwd.3
= control target key start
LH: loop header
LB: loop body
LE: loop exit
PB: predicated region body
PF: predicated region fallthrough
CT: control target
= control target key end

     0   :  { %v595_v0 = vmov 0.0|0.0   ;;  %vm596_vm0 = vmmov 0   ;;  %v597_v3 = vmov 0.0   ;;  %v598_v6 = vmov 17   ;;  %s600_s19 = smov 32   ;;  %s601_s22 = smov 56   ;;  %s709_s1 = inlined_call_operand.vmem [shape: f32[152,32], index: 1, kind: input, shape index: {}]   ;;  %s710_s0 = inlined_call_operand.vmem [shape: f32[8,18], index: 0, kind: input, shape index: {}]   ;;  %s711_s2 = inlined_call_operand.vmem [shape: f32[8,128], index: 2, kind: output, shape index: {}]  }
   0x1   :  { %559 = vmatprep.subr.bf16.mxu0 %v595_v0  ;;  %v12_v1 = vld [vmem:[%s709_s1] sm:$0xff]  ;;  %v13_v2 = vld [vmem:[%s709_s1 + $0x8] sm:$0xff]  ;;  %518 = vmatprep.mubr.msk.f32.mxu0 %vm596_vm0, %v597_v3  ;;  %v599_v8 = vmov 0   ;;  %vm19_vm4 = vcmask 130048   ;;  %v130_v12 = vld [vmem:[%s709_s1 + $0x18] sm:$0xff]  ;;  %vm142_vm5 = vcmask 1040384  }
   0x2   :  { %v11_v4 = vld [vmem:[%s710_s0] sm:$0xff]  ;;  %v560_v5 = vpack.c.bf16 %v13_v2, %v12_v1  ;;  %587 = vset.pattern.permute.xlu0 %v598_v6  ;;  %588 = vset.pattern.permute.xlu1 %v598_v6  ;;  %v132_v15 = vld [vmem:[%s709_s1 + $0x28] sm:$0x1]  ;;  %v483_v16 = vld [vmem:[%s709_s1 + $0x10] ss:$0 sm:$0xff]  ;;  %vm138_vm9 = vcmask 138240  }
   0x3   :  { %v122_v7 = vadd.f32 1.0, %v11_v4  ;;  %vm104_vm1 = vcmp.ge.f32.partialorder %v11_v4, 2.0  ;;  %vm95_vm2 = vcmp.ge.f32.partialorder %v11_v4, 1.0  ;;  %vm113_vm3 = vcmp.ge.f32.partialorder %v11_v4, 3.0  ;;  %562 = vmatprep.subr.bf16.mxu1 %v595_v0  ;;  %527 = vmatprep.mubr.msk.f32.mxu1 %vm596_vm0, %v597_v3  ;;  %v131_v13 = vld [vmem:[%s709_s1 + $0x20] sm:$0xff]  ;;  %v217_v37 = vld [vmem:[%s709_s1 + $0x30] sm:$0xff] }
   0x4   :  { %v106_v9 = vsel %vm104_vm1, 1, %v599_v8  ;;  %561 = vmatpush3.bf16.msra.mxu0 %v560_v5  ;;  %v97_v10 = vsel %vm95_vm2, 1, %v599_v8  ;;  %v115_v11 = vsel %vm113_vm3, 1, %v599_v8  ;;  %v563_v14 = vpack.c.bf16 %v131_v13, %v130_v12  ;;  %v218_v38 = vld [vmem:[%s709_s1 + $0x38] sm:$0xff]  ;;  %v303_v41 = vld [vmem:[%s709_s1 + $0x60] sm:$0xff]  ;;  %v220_v43 = vld [vmem:[%s709_s1 + $0x48] sm:$0xff] }
   0x5   :  { %125 = vperm.xlu0 %587, %v122_v7   ;;  %108 = vperm.xlu1 %588, %v106_v9   ;;  %v302_v39 = vld [vmem:[%s709_s1 + $0x58] sm:$0xff]  ;;  %v566_v40 = vpack.c.bf16 %v218_v38, %v217_v37  ;;  %v219_v42 = vld [vmem:[%s709_s1 + $0x40] sm:$0xff]  ;;  %v304_v46 = vld [vmem:[%s709_s1 + $0x68] sm:$0xff]  ;;  %vm226_vm10 = vcmask 261120   ;;  %vm474_vm11 = vcmask 457728   ;;  %vm476_vm12 = vcmask 588800  }
   0x6   :  { %565 = vmatprep.subr.bf16.mxu0 %v595_v0  ;;  %564 = vmatpush3.bf16.msra.mxu1 %v563_v14  ;;  %v572_v44 = vpack.c.bf16 %v303_v41, %v302_v39  ;;  %v569_v45 = vpack.c.bf16 %v220_v43, %v219_v42  ;;  %v305_v47 = vld [vmem:[%s709_s1 + $0x70] sm:$0xff]  ;;  %v485_v49 = vld [vmem:[%s709_s1 + $0x29] ss:$0 sm:$0xff]  ;;  %v385_v56 = vld [vmem:[%s709_s1 + $0x80] sm:$0xff] }
   0x7   :  { %519 = vmatmul.mubr.msk.f32.vlgmr.msra.gmra.mrb[0].mxu0 %vm19_vm4, %v11_v4  ;;  %525 = vmatprep.subr.mxu1 %v597_v3  ;;  %v575_v48 = vpack.c.bf16 %v305_v47, %v304_v46  ;;  %v386_v57 = vld [vmem:[%s709_s1 + $0x88] sm:$0xff]  ;;  %v488_v59 = vld [vmem:[%s709_s1 + $0x50] ss:$0 sm:$0xff]  ;;  %v490_v63 = vld [vmem:[%s709_s1 + $0x78] ss:$0 sm:$0xff] }
   0x8   :  { %538 = vmatprep.mubr.msk.f32.mxu0 %vm596_vm0, %v597_v3  ;;  %567 = vmatpush3.bf16.msra.mxu0 %v566_v40  ;;  %v578_v58 = vpack.c.bf16 %v386_v57, %v385_v56 }
   0x9   :  { %99 = vperm.xlu0 %587, %v97_v10   ;;  %117 = vperm.xlu1 %588, %v115_v11  }
   0xa   :  { %526 = vmatpush3.msk.msra.mxu1 %vm142_vm5, %v132_v15  ;;  %568 = vmatprep.subr.bf16.mxu0 %v595_v0 }
   0xb   :  { %571 = vmatprep.subr.bf16.mxu1 %v595_v0 }
   0xc   :  { %570 = vmatpush3.bf16.msra.mxu0 %v569_v45 }
   0xd   :  { %577 = vmatprep.subr.bf16.mxu0 %v595_v0 }
  0x84   :  { %v126_v20 = vpop.permute.xlu0 %125  ;;  %v109_v21 = vpop.permute.xlu1 %108 }
  0x85   :  { %vm110_vm6 = vcmp.eq.s32.totalorder %v109_v21, 1 }
  0x88   :  { %v100_v23 = vpop.permute.xlu0 %99  ;;  %v118_v27 = vpop.permute.xlu1 %117 }
  0x89   :  { %vm101_vm7 = vcmp.eq.s32.totalorder %v100_v23, 1  ;;  %vm119_vm8 = vcmp.eq.s32.totalorder %v118_v27, 1 }
  0xda   :  { %v89_v17 = vpop.f32.mrb[0].mxu0 }
  0xdb   :  { %v90_v18 = vadd.f32 %v483_v16, %v89_v17  ;;  %v520_v19 = vpop.f32.mrb[1].mxu0 }
  0xdd   :  { %589 = vtanh.f32 %v90_v18 }
  0xde   :  { %591 = vrcp.f32 %v126_v20 }
  0xe7   :  { %v590_v22 = vpop.eup %589 }
  0xe8   :  { %v94_v24 = vsel %vm19_vm4, %v590_v22, %v11_v4  ;;  %v592_v33 = vpop.eup %591  ;;  %v492_v4 = vld [vmem:[%s709_s1 + $0x90] ss:$0 sm:$0xff] }
  0xe9   :  { %v105_v25 = vrot.slane %v94_v24, 6  ;;  %v96_v26 = vrot.slane %v94_v24, 7  ;;  %v114_v29 = vrot.slane %v94_v24, 5 }
  0xeb   :  { %v102_v28 = vsel %vm101_vm7, %v96_v26, 0.0  ;;  %v111_v31 = vsel %vm110_vm6, %v105_v25, 0.0  ;;  %v120_v34 = vsel %vm119_vm8, %v114_v29, 0.0 }
  0xec   :  { %v103_v30 = vadd.f32 %v102_v28, %v94_v24 }
  0xee   :  { %v112_v32 = vadd.f32 %v111_v31, %v103_v30 }
  0xf0   :  { %v121_v35 = vadd.f32 %v120_v34, %v112_v32 }
  0xf2   :  { %v129_v36 = vmul.f32 %v592_v33, %v121_v35 }
  0xf4   :  { %528 = vmatmul.mubr.msk.f32.vlgmr.msra.gmra.mrb[0].mxu1 %vm138_vm9, %v129_v36 }
  0xf5   :  { %549 = vmatprep.mubr.msk.f32.mxu1 %vm596_vm0, %v597_v3  ;;  %573 = vmatpush3.bf16.msra.mxu1 %v572_v44 }
  0xf6   :  { %574 = vmatprep.subr.bf16.mxu1 %v595_v0 }
  0xf9   :  { %576 = vmatpush3.bf16.msra.mxu1 %v575_v48 }
 0x1c7   :  { %v212_v50 = vpop.f32.mrb[0].mxu1 }
 0x1c8   :  { %v213_v51 = vadd.f32 %v485_v49, %v212_v50  ;;  %v529_v52 = vpop.f32.mrb[1].mxu1 }
 0x1ca   :  { %593 = vtanh.f32 %v213_v51 }
 0x1d4   :  { %v594_v53 = vpop.eup %593 }
 0x1d5   :  { %539 = vmatmul.mubr.msk.f32.vlgmr.msra.gmra.mrb[2].mxu0 %vm226_vm10, %v594_v53  ;;  %v300_v54 = vrot.slane %v594_v53, 7 }
 0x1d6   :  { %556 = vmatprep.mubr.msk.f32.mxu0 %vm596_vm0, %v597_v3  ;;  %579 = vmatpush3.bf16.msra.mxu0 %v578_v58 }
 0x1d7   :  { %v301_v55 = vsel %vm101_vm7, %v300_v54, 0.0 }
 0x1d8   :  { %550 = vmatmul.mubr.msk.f32.vlgmr.msra.gmra.mrb[2].mxu1 %vm226_vm10, %v301_v55 }
 0x2a8   :  { %v296_v60 = vpop.f32.mrb[2].mxu0 }
 0x2a9   :  { %v297_v61 = vadd.f32 %v488_v59, %v296_v60  ;;  %v540_v62 = vpop.f32.mrb[3].mxu0 }
 0x2ab   :  { %v380_v0 = vpop.f32.mrb[2].mxu1  ;;  %466 = vrot.lane.b32.xlu0 %v297_v61, %s600_s19 }
 0x2ac   :  { %v381_v1 = vadd.f32 %v490_v63, %v380_v0  ;;  %v551_v2 = vpop.f32.mrb[3].mxu1 }
 0x2ae   :  { %v384_v3 = vmax.f32 %v381_v1, 0.0 }
 0x2b0   :  { %557 = vmatmul.mubr.msk.f32.vlgmr.msra.gmra.mrb[4].mxu0 %vm19_vm4, %v384_v3 }
 0x31d   :  { %v467_v8 = vpop.permute.xlu0 %466 }
 0x31e   :  { %v473_v9 = vsel %vm226_vm10, %v301_v55, %v467_v8 }
 0x383   :  { %v461_v5 = vpop.f32.mrb[4].mxu0 }
 0x384   :  { %v462_v6 = vadd.f32 %v492_v4, %v461_v5  ;;  %v558_v7 = vpop.f32.mrb[5].mxu0 }
 0x386   :  { %470 = vrot.lane.b32.xlu1 %v462_v6, %s601_s22 }
 0x3f8   :  { %v471_v10 = vpop.permute.xlu1 %470 }
 0x3f9   :  { %v475_v11 = vsel %vm474_vm11, %v473_v9, %v471_v10 }
 0x3fa   :  { %v477_v12 = vsel %vm476_vm12, %v475_v11, 0.0 }
 0x3fb   :  { %478 = vst [vmem:[%s711_s2] sm:$0xff] %v477_v12 }

// kernel: _fwd.4
= control target key start
LH: loop header
LB: loop body
LE: loop exit
PB: predicated region body
PF: predicated region fallthrough
CT: control target
= control target key end

     0   :  { %vm30_vm0 = vcmask 130048   ;;  %vm34_vm1 = vcmask 125952   ;;  %v392_v7 = vmov 0   ;;  %v393_v23 = vmov 0.0|0.0   ;;  %s481_s0 = inlined_call_operand.vmem [shape: f32[12,16], index: 0, kind: input, shape index: {}]   ;;  %s482_s4 = inlined_call_operand.vmem [shape: f32[64,24], index: 4, kind: input, shape index: {}]   ;;  %s483_s2 = inlined_call_operand.vmem [shape: f32[12,16], index: 2, kind: input, shape index: {}]   ;;  %s484_s1 = inlined_call_operand.vmem [shape: f32[8,12], index: 1, kind: input, shape index: {}]   ;;  %s485_s3 = inlined_call_operand.vmem [shape: f32[8,24], index: 3, kind: input, shape index: {}]   ;;  %s486_s5 = inlined_call_operand.vmem [shape: f32[8,128], index: 5, kind: output, shape index: {}]  }
   0x1   :  { %v322_v0 = vld [vmem:[%s482_s4] ss:$0 sm:$0xff]  ;;  %v23_v2 = vld [vmem:[%s481_s0 + $0x8] sm:$0xf]  ;;  %378 = vset.pattern.permute.xlu1 %v392_v7  ;;  %379 = vset.pattern.permute.xlu0 %v392_v7  ;;  %v323_v8 = vld [vmem:[%s482_s4 + $0x1] ss:$0 sm:$0xff] }
   0x2   :  { %v22_v1 = vld [vmem:[%s481_s0] sm:$0xff]  ;;  %v29_v4 = vmul.f32 %v322_v0, %v23_v2  ;;  %363 = vmatprep.subr.bf16.mxu1 %v393_v23  ;;  %370 = vmatprep.subr.bf16.mxu0 %v393_v23  ;;  %vm394_vm2 = vmmov 0   ;;  %v395_v24 = vmov 0.0   ;;  %v56_v27 = vld [vmem:[%s483_s2 + $0x8] sm:$0xf]  ;;  %vm73_vm3 = vcmask 1043456  }
   0x3   :  { %v28_v3 = vmul.f32 %v322_v0, %v22_v1  ;;  %344 = vmatprep.mubr.msk.f32.mxu1 %vm394_vm2, %v395_v24  ;;  %360 = vmatprep.mubr.msk.f32.mxu0 %vm394_vm2, %v395_v24  ;;  %v55_v26 = vld [vmem:[%s483_s2] sm:$0xff]  ;;  %vm396_vm4 = vmmov 1   ;;  %v147_v31 = vld [vmem:[%s482_s4 + $0x8] sm:$0xff]  ;;  %v148_v32 = vld [vmem:[%s482_s4 + $0x10] sm:$0xff]  ;;  %vm69_vm6 = vcmask 97280   ;;  %vm242_vm7 = vcmask 195584  }
   0x4   :  { %v35_v6 = vsel %vm34_vm1, %v29_v4, 0.0  ;;  %vm365_vm5 = vmpackc.low %vm73_vm3, %vm396_vm4  ;;  %v54_v34 = vld [vmem:[%s484_s1] sm:$0xff]  ;;  %v368_v35 = vpack.c.bf16 %v148_v32, %v147_v31  ;;  %v235_v39 = vld [vmem:[%s482_s4 + $0x28] sm:$0xff] }
   0x5   :  { %v31_v5 = vsel %vm30_vm0, %v28_v3, 0.0  ;;  %v234_v38 = vld [vmem:[%s482_s4 + $0x20] sm:$0xff]  ;;  %v236_v41 = vld [vmem:[%s482_s4 + $0x30] sm:$0xff]  ;;  %v326_v42 = vld [vmem:[%s482_s4 + $0x18] ss:$0 sm:$0xff] }
   0x6   :  { %32 = vadd.xlane.f32.xlu0 %v31_v5  ;;  %v371_v40 = vpack.c.bf16 %v235_v39, %v234_v38  ;;  %v227_v44 = vld [vmem:[%s485_s3] sm:$0xff]  ;;  %v328_v53 = vld [vmem:[%s482_s4 + $0x38] ss:$0 sm:$0xff] }
   0x8   :  { %372 = vmatpush3.bf16.msra.mxu0 %v371_v40 }
   0x9   :  { %358 = vmatprep.subr.mxu0 %v395_v24 }
   0xa   :  { %36 = vadd.xlane.f32.xlu0 %v35_v6 }
   0xc   :  { %359 = vmatpush3.msra.mxu0 %v236_v41 }
  0x93   :  { %v33_v9 = vpop.xlane.xlu0 %32 }
  0x94   :  { %v42_v10 = vadd.f32 %v323_v8, %v33_v9 }
  0x96   :  { %v44_v11 = vsub.f32 0.0, %v42_v10 }
  0x97   :  { %v37_v12 = vpop.xlane.xlu0 %36 }
  0x98   :  { %v46_v13 = vmul.f32 1.442695, %v44_v11  ;;  %v43_v14 = vadd.f32 %v323_v8, %v37_v12 }
  0x9a   :  { %380 = vpow2.f32 %v46_v13  ;;  %v45_v15 = vsub.f32 0.0, %v43_v14 }
  0x9c   :  { %v48_v16 = vmul.f32 1.442695, %v45_v15 }
  0x9e   :  { %382 = vpow2.f32 %v48_v16 }
  0xa4   :  { %v381_v17 = vpop.eup %380 }
  0xa5   :  { %v50_v18 = vadd.f32 1.0, %v381_v17 }
  0xa7   :  { %384 = vrcp.f32 %v50_v18 }
  0xa8   :  { %v383_v19 = vpop.eup %382 }
  0xa9   :  { %v51_v20 = vadd.f32 1.0, %v383_v19 }
  0xab   :  { %386 = vrcp.f32 %v51_v20 }
  0xb1   :  { %v385_v21 = vpop.eup %384 }
  0xb2   :  { %59 = vperm.xlu1 %378, %v385_v21  }
  0xb5   :  { %v387_v22 = vpop.eup %386 }
  0xb6   :  { %64 = vperm.xlu1 %378, %v387_v22  }
 0x131   :  { %v60_v25 = vpop.permute.xlu1 %59 }
 0x132   :  { %v67_v29 = vmul.f32 %v60_v25, %v55_v26 }
 0x135   :  { %v65_v28 = vpop.permute.xlu1 %64 }
 0x136   :  { %v68_v30 = vmul.f32 %v65_v28, %v56_v27 }
 0x138   :  { %v364_v33 = vpack.c.bf16 %v68_v30, %v67_v29 }
 0x13a   :  { %366 = vmatpush3.bf16.msk.msra.mxu1 %vm365_vm5, %v364_v33 }
 0x13b   :  { %367 = vmatprep.subr.bf16.mxu1 %v393_v23 }
 0x13d   :  { %345 = vmatmul.mubr.msk.f32.vlgmr.msra.gmra.mrb[0].mxu1 %vm69_vm6, %v54_v34 }
 0x13e   :  { %369 = vmatpush3.bf16.msra.mxu1 %v368_v35  ;;  %351 = vmatprep.mubr.msk.f32.mxu1 %vm394_vm2, %v395_v24 }
 0x210   :  { %v143_v36 = vpop.f32.mrb[0].mxu1 }
 0x211   :  { %v346_v37 = vpop.f32.mrb[1].mxu1  ;;  %352 = vmatmul.mubr.msk.f32.vlgmr.msra.gmra.mrb[2].mxu1 %vm30_vm0, %v143_v36 }
 0x2e4   :  { %v223_v43 = vpop.f32.mrb[2].mxu1 }
 0x2e5   :  { %v224_v45 = vadd.f32 %v326_v42, %v223_v43  ;;  %v353_v46 = vpop.f32.mrb[3].mxu1 }
 0x2e7   :  { %v228_v47 = vadd.f32 %v227_v44, %v224_v45 }
 0x2e9   :  { %v229_v48 = vsub.f32 0.0, %v228_v47 }
 0x2eb   :  { %v230_v49 = vmul.f32 1.442695, %v229_v48 }
 0x2ed   :  { %388 = vpow2.f32 %v230_v49 }
 0x2f7   :  { %v389_v50 = vpop.eup %388 }
 0x2f8   :  { %v232_v51 = vadd.f32 1.0, %v389_v50 }
 0x2fa   :  { %390 = vrcp.f32 %v232_v51 }
 0x304   :  { %v391_v52 = vpop.eup %390 }
 0x305   :  { %361 = vmatmul.mubr.msk.f32.vlgmr.msra.gmra.mrb[0].mxu0 %vm242_vm7, %v391_v52 }
 0x3d8   :  { %v312_v54 = vpop.f32.mrb[0].mxu0 }
 0x3d9   :  { %v313_v55 = vadd.f32 %v328_v53, %v312_v54  ;;  %v362_v56 = vpop.f32.mrb[1].mxu0 }
 0x3db   :  { %v316_v57 = vsel %vm30_vm0, %v313_v55, 0.0 }
 0x3dc   :  { %317 = vst [vmem:[%s486_s5] sm:$0xff] %v316_v57 }

// kernel: _fwd.5
= control target key start
LH: loop header
LB: loop body
LE: loop exit
PB: predicated region body
PF: predicated region fallthrough
CT: control target
= control target key end

     0   :  { %s715_s15 = smov 0   ;;  %s809_s0 = inlined_call_operand.vmem [shape: f32[40,16], index: 0, kind: input, shape index: {}]   ;;  %s810_s1 = inlined_call_operand.vmem [shape: f32[5,40], index: 1, kind: input, shape index: {}]   ;;  %s811_s2 = inlined_call_operand.vmem [shape: f32[5,16], index: 2, kind: input, shape index: {}]   ;;  %s812_s3 = inlined_call_operand.vmem [shape: f32[120,32], index: 3, kind: input, shape index: {}]   ;;  %s813_s4 = inlined_call_operand.vmem [shape: f32[40,128], index: 4, kind: output, shape index: {}]  }
   0x1 LB: > { %s721_s16 = sadd.s32 4294967295, %s683_s15   ;;  %p577_p0 = scmp.ge.s32.totalorder %s683_s15, 1  ;;  %s683_s15 = sphi %s715_s15, %s14_s15  }
   0x2   : > { %p161_p1 = scmp.lt.s32.totalorder %s683_s15, 6 }
   0x4   : > { %p162_p2 = pnand %p577_p0, %p161_p1 }
   0x5   : > { %v197_v0 = vld [vmem:[%s812_s3 + $0x18] sm:$0xff] (!%p162_p2)  ;;  %v198_v1 = vld [vmem:[%s812_s3 + $0x20] sm:$0xff] (!%p162_p2)  ;;  %v199_v2 = vld [vmem:[%s812_s3 + $0x28] sm:$0xff] (!%p162_p2)  ;;  %v685_v3 = vmov (!%p162_p2), 0.0|0.0   ;;  %vm686_vm0 = vmmov (!%p162_p2), 0   ;;  %v687_v6 = vmov (!%p162_p2), 0.0   ;;  %s193_s7 = scalar_lea.vmem (!%p162_p2), %s810_s1, %s721_s16  ;;  %s195_s23 = scalar_lea.vmem (!%p162_p2), %s811_s2, %s721_s16  ;;  %v280_v22 = vlaneseq (!%p162_p2) }
   0x6   : > { %165 = sbr.rel (%p162_p2) target bundleno = 781 (0x30d), region = 36  ;;  %633 = vmatprep.subr.bf16.mxu0 (!%p162_p2), %v685_v3  ;;  %v634_v4 = vpack.c.bf16 (!%p162_p2), %v198_v1, %v197_v0  ;;  %v200_v5 = vld [vmem:[%s812_s3 + $0x30] sm:$0xff] (!%p162_p2)  ;;  %612 = vmatprep.mubr.msk.f32.mxu0 (!%p162_p2), %vm686_vm0, %v687_v6  ;;  %p185_p3 = scmp.lt.s32.totalorder (!%p162_p2), %s721_s16, 4  ;;  %v277_v7 = vld [vmem:[%s812_s3] sm:$0xff] (!%p162_p2)  ;;  %v278_v8 = vld [vmem:[%s812_s3 + $0x8] sm:$0xff] (!%p162_p2)  ;;  %vm284_vm1 = vcmask (!%p162_p2), 130048  }
   0x7   : > { %639 = vmatprep.subr.bf16.mxu1 (!%p162_p2), %v685_v3  ;;  %619 = vmatprep.mubr.msk.f32.mxu1 (!%p162_p2), %vm686_vm0, %v687_v6  ;;  %v637_v9 = vpack.c.bf16 (!%p162_p2), %v200_v5, %v199_v2  ;;  %v640_v10 = vpack.c.bf16 (!%p162_p2), %v278_v8, %v277_v7  ;;  %v201_v12 = vld [vmem:[%s812_s3 + $0x38] sm:$0xff] (!%p162_p2)  ;;  %v194_v13 = vld [vmem:[%s193_s7] sm:$0x1] (!%p162_p2)  ;;  %vm203_vm2 = vcmask (!%p162_p2), 326656   ;;  %v359_v14 = vld [vmem:[%s812_s3 + $0x48] sm:$0xff] (!%p162_p2)  ;;  %vm454_vm3 = vcmask (!%p162_p2), 122880  }
   0x8   : > { %635 = vmatpush3.bf16.msra.mxu0 (!%p162_p2), %v634_v4  ;;  %v360_v15 = vld [vmem:[%s812_s3 + $0x50] sm:$0xff] (!%p162_p2)  ;;  %v361_v16 = vld [vmem:[%s812_s3 + $0x58] sm:$0xff] (!%p162_p2)  ;;  %v362_v18 = vld [vmem:[%s812_s3 + $0x60] sm:$0xff] (!%p162_p2)  ;;  %v780_v23 = vshrl.u32 (!%p162_p2), %v280_v22, 7  ;;  %vm368_vm4 = vcmask (!%p162_p2), 261120   ;;  %v688_v37 = vmov (!%p162_p2), 0  }
   0x9   : > { %636 = vmatprep.subr.bf16.mxu0 (!%p162_p2), %v685_v3  ;;  %641 = vmatpush3.bf16.msra.mxu1 (!%p162_p2), %v640_v10  ;;  %v643_v17 = vpack.c.bf16 (!%p162_p2), %v360_v15, %v359_v14  ;;  %v196_v19 = vld [vmem:[%s195_s23] sm:$0x1] (!%p162_p2)  ;;  %v646_v21 = vpack.c.bf16 (!%p162_p2), %v362_v18, %v361_v16  ;;  %v584_v33 = vld [vmem:[%s812_s3 + $0x70] ss:$0 sm:$0xff] (!%p162_p2)  ;;  %v585_v39 = vld [vmem:[%s812_s3 + $0x71] ss:$0 sm:$0xff] (!%p162_p2) }
   0xa   : > { %642 = vmatprep.subr.bf16.mxu1 (!%p162_p2), %v685_v3  ;;  %v455_v20 = vsel (!%p162_p2), %vm454_vm3, %v196_v19, -inf  ;;  %v202_v26 = vld [vmem:[%s812_s3 + $0x40] sm:$0x1] (!%p162_p2)  ;;  %v282_v27 = vsub.s32 (!%p162_p2), 0, %v780_v23  ;;  %661 = vset.pattern.permute.xlu0 (!%p162_p2), %v688_v37  ;;  %v582_v54 = vld [vmem:[%s812_s3 + $0x68] ss:$0 sm:$0xff] (!%p162_p2) }
   0xb   : > { %456 = vmax.xlane.f32.xlu0 (!%p162_p2), %v455_v20  ;;  %662 = vset.pattern.permute.xlu1 (!%p162_p2), %v688_v37  ;;  %s689_s9 = smov (!%p162_p2), 32   ;;  %vm515_vm5 = vcmask (!%p162_p2), 392192  }
   0xc   : > { %638 = vmatpush3.bf16.msra.mxu0 (!%p162_p2), %v637_v9 }
   0xd   : > { %s747_s29 = scalar_select %p185_p3, %s721_s16, 4  ;;  %610 = vmatprep.subr.mxu0 %v687_v6 }
   0xf   : > { %s578_s30 = sshll.u32 %s747_s29, 3 }
  0x10   : > { %s188_s10 = scalar_lea.vmem %s809_s0, %s578_s30  ;;  %611 = vmatpush3.msra.mxu0 %v201_v12  ;;  %s192_s12 = scalar_lea.vmem %s813_s4, %s578_s30 }
  0x11   : > { %v279_v11 = vld [vmem:[%s188_s10] sm:$0xff]  ;;  %613 = vmatmul.mubr.msk.f32.vlgmr.msra.gmra.mrb[0].mxu0 %vm203_vm2, %v194_v13 }
  0x12   : > { %620 = vmatmul.mubr.msk.f32.vlgmr.msra.gmra.mrb[0].mxu1 %vm284_vm1, %v279_v11 }
  0x13   : > { %630 = vmatprep.mubr.msk.f32.mxu1 %vm686_vm0, %v687_v6  ;;  %644 = vmatpush3.bf16.msra.mxu1 %v643_v17 }
  0x14   : > { %645 = vmatprep.subr.bf16.mxu1 %v685_v3 }
  0x17   : > { %647 = vmatpush3.bf16.msra.mxu1 %v646_v21 }
  0x98   : > { %v457_v38 = vpop.xlane.xlu0 %456 }
  0x99   : > { %v458_v52 = vsub.f32 %v196_v19, %v457_v38 }
  0x9b   : > { %v459_v53 = vmul.f32 1.442695, %v458_v52 }
  0xe4   : > { %v273_v28 = vpop.f32.mrb[0].mxu0 }
  0xe5   : > { %v354_v24 = vpop.f32.mrb[0].mxu1  ;;  %v274_v29 = vadd.f32 %v273_v28, %v202_v26  ;;  %v614_v30 = vpop.f32.mrb[1].mxu0 }
  0xe6   : > { %v621_v25 = vpop.f32.mrb[1].mxu1 }
  0xe7   : > { %v283_v31 = vrot.slane %v274_v29, %v282_v27 }
  0xe9   : > { %v355_v32 = vadd.f32 %v354_v24, %v283_v31 }
  0xeb   : > { %663 = vtanh.f32 %v355_v32 }
  0xf5   : > { %v664_v34 = vpop.eup %663 }
  0xf6   : > { %631 = vmatmul.mubr.msk.f32.vlgmr.msra.gmra.mrb[2].mxu1 %vm368_vm4, %v664_v34  ;;  %v473_v35 = vmul.f32 %v664_v34, %v584_v33 }
  0xf8   : > { %v474_v36 = vsel %vm368_vm4, %v473_v35, 0.0 }
  0xf9   : > { %475 = vadd.xlane.f32.xlu0 %v474_v36 }
 0x186   : > { %v476_v40 = vpop.xlane.xlu0 %475 }
 0x187   : > { %v481_v41 = vadd.f32 %v585_v39, %v476_v40 }
 0x189   : > { %v482_v42 = vand.u32 2147483647, %v481_v41  ;;  %v491_v47 = vsub.f32 0.0, %v481_v41  ;;  %v489_v61 = vmin.f32 %v481_v41, 0.0 }
 0x18b   : > { %v483_v43 = vsub.f32 0.0, %v482_v42  ;;  %v492_v49 = vmin.f32 %v491_v47, 0.0 }
 0x18d   : > { %v484_v44 = vmul.f32 1.442695, %v483_v43 }
 0x18f   : > { %665 = vpow2.f32 %v484_v44 }
 0x199   : > { %v666_v45 = vpop.eup %665 }
 0x19a   : > { %v486_v46 = vadd.f32 1.0, %v666_v45 }
 0x19c   : > { %667 = vlog2.f32 %v486_v46 }
 0x19d   : > { %669 = vpow2.f32 %v459_v53 }
 0x1a6   : > { %v668_v48 = vpop.eup %667 }
 0x1a7   : > { %v488_v50 = vmul.f32 0.6931472, %v668_v48  ;;  %v670_v58 = vpop.eup %669 }
 0x1a8   : > { %v461_v60 = vsel %vm454_vm3, %v670_v58, 0.0 }
 0x1a9   : > { %v493_v51 = vsub.f32 %v492_v49, %v488_v50  ;;  %v490_v62 = vsub.f32 %v489_v61, %v488_v50 }
 0x1ab   : > { %506 = vperm.xlu0 %661, %v493_v51  }
 0x1c9   : > { %v438_v55 = vpop.f32.mrb[2].mxu1 }
 0x1ca   : > { %v439_v56 = vadd.f32 %v582_v54, %v438_v55  ;;  %v632_v57 = vpop.f32.mrb[3].mxu1 }
 0x1cc   : > { %v442_v59 = vsel %vm368_vm4, %v439_v56, -inf }
 0x1cd   : > { %443 = vmax.xlane.f32.xlu1 %v442_v59 }
 0x1d1   : > { %462 = vadd.xlane.f32.xlu1 %v461_v60 }
 0x1e2   : > { %496 = vperm.xlu1 %662, %v490_v62  }
 0x22a   : > { %v507_v9 = vpop.permute.xlu0 %506 }
 0x25a   : > { %v444_v63 = vpop.xlane.xlu1 %443 }
 0x25b   : > { %v445_v0 = vsub.f32 %v439_v56, %v444_v63 }
 0x25d   : > { %v446_v1 = vmul.f32 1.442695, %v445_v0 }
 0x25e   : > { %v463_v2 = vpop.xlane.xlu1 %462 }
 0x25f   : > { %671 = vpow2.f32 %v446_v1 }
 0x260   : > { %673 = vlog2.f32 %v463_v2 }
 0x262   : > { %v497_v11 = vpop.permute.xlu1 %496 }
 0x269   : > { %v672_v3 = vpop.eup %671 }
 0x26a   : > { %v448_v4 = vsel %vm368_vm4, %v672_v3, 0.0  ;;  %v674_v5 = vpop.eup %673 }
 0x26b   : > { %449 = vadd.xlane.f32.xlu1 %v448_v4  ;;  %v465_v6 = vmul.f32 0.6931472, %v674_v5 }
 0x26d   : > { %v466_v7 = vsub.f32 %v458_v52, %v465_v6 }
 0x26f   : > { %v503_v8 = vrot.slane %v466_v7, %v282_v27 }
 0x271   : > { %v509_v10 = vadd.f32 %v507_v9, %v503_v8 }
 0x27c   : > { %511 = vrot.lane.b32.xlu1 %v509_v10, %s689_s9 }
 0x2f8   : > { %v450_v12 = vpop.xlane.xlu1 %449 }
 0x2f9   : > { %675 = vlog2.f32 %v450_v12 }
 0x2fc   : > { %v512_v17 = vpop.permute.xlu1 %511 }
 0x303   : > { %v676_v13 = vpop.eup %675 }
 0x304   : > { %v452_v14 = vmul.f32 0.6931472, %v676_v13 }
 0x306   : > { %v453_v15 = vsub.f32 %v445_v0, %v452_v14 }
 0x308   : > { %v499_v16 = vadd.f32 %v497_v11, %v453_v15 }
 0x30a   : > { %v514_v18 = vsel %vm368_vm4, %v499_v16, %v512_v17 }
 0x30b   : > { %v516_v19 = vsel %vm515_vm5, %v514_v18, 0.0 }
 0x30c   : > { %517 = vst [vmem:[%s192_s12] sm:$0xff] %v516_v19 }
 0x30d PF: > { %s14_s15 = sadd.s32 1, %s683_s15  }
 0x30e   : > { %p11_p4 = scmp.ge.s32.totalorder %s14_s15, 7  }
 0x310   :  { %13 = sbr.rel (!%p11_p4) target bundleno = 1 (0x1), region = 68 }

</bundles_post_ra>
